<compile_context>
chip_gen: v6e
topology: v6e:2x2x1
jax: 0.10.0
libtpu: 0.0.40
codegen_flags: <defaults>
</compile_context>

<pallas_src>
import functools

import jax
import jax.numpy as jnp
from jax.experimental import pallas as pl
from jax.experimental.pallas import tpu as pltpu


def _round_up(v, m):
    return ((v + m - 1) // m) * m


def _mlp_kernel(x_ref, w1_ref, b1_ref, w2_ref, b2_ref, w3_ref, b3_ref, o_ref):
    # Three matmuls + ReLUs fused for one batch tile.
    # f32 -> bf16 cast of the activation happens here (VPU), not in the wrapper.
    x = x_ref[...].astype(jnp.bfloat16)
    h1 = jnp.dot(x, w1_ref[...], preferred_element_type=jnp.float32) + b1_ref[...]
    h1 = jnp.maximum(h1, 0.0)
    h2 = jnp.dot(h1.astype(jnp.bfloat16), w2_ref[...],
                 preferred_element_type=jnp.float32) + b2_ref[...]
    h2 = jnp.maximum(h2, 0.0)
    out = jnp.dot(h2.astype(jnp.bfloat16), w3_ref[...],
                  preferred_element_type=jnp.float32) + b3_ref[...]
    o_ref[...] = out.astype(o_ref.dtype)


@functools.partial(jax.jit, static_argnames=("block_b_max",))
def simple_dnn_forward(x, params, *, block_b_max=1024):
    """Fused forward pass of SimpleDNN.

    x:      (B, input_dim) float32
    params: dict (from prepare_params) with
              w1 (D,256) bf16, b1 (1,256) f32,
              w2 (256,128) bf16, b2 (1,128) f32,
              w3 (128,C) bf16, b3 (1,C) f32
    returns (B, C) float32 logits
    """
    w1, b1 = params["w1"], params["b1"]
    w2, b2 = params["w2"], params["b2"]
    w3, b3 = params["w3"], params["b3"]

    B, D = x.shape
    H1 = w1.shape[1]
    H2 = w2.shape[1]
    C = w3.shape[1]

    # Pad batch only to a multiple of 128 (MXU-height / sublane friendly).
    B_pad = _round_up(B, 128)

    # Pick the largest batch tile from {1024,512,256,128} that divides B_pad,
    # capped so that the grid has >= 2 steps once B_pad >= 256 (keeps both
    # TensorCores busy on v7x; negligible cost on single-TC v5e/v6e).
    cap = B_pad // 2 if B_pad >= 256 else B_pad
    cap = min(cap, block_b_max)
    block_b = 128
    for cand in (1024, 512, 256, 128):
        if cand <= cap and B_pad % cand == 0:
            block_b = cand
            break

    # Only batch-row zero-pad of x (f32); skipped entirely if already aligned.
    x_p = x if B_pad == B else jnp.pad(x, ((0, B_pad - B), (0, 0)))

    grid = (B_pad // block_b,)

    # Weights/biases: constant index_map -> resident across the grid.
    full = lambda shape: pl.BlockSpec(shape, lambda i: (0, 0))

    out_padded = pl.pallas_call(
        _mlp_kernel,
        out_shape=jax.ShapeDtypeStruct((B_pad, C), jnp.float32),
        grid_spec=pl.GridSpec(
            grid=grid,
            in_specs=[
                pl.BlockSpec((block_b, D), lambda i: (i, 0)),   # x tile (streamed)
                full((D, H1)), full((1, H1)),                    # layer 1
                full((H1, H2)), full((1, H2)),                   # layer 2
                full((H2, C)), full((1, C)),                     # layer 3 (narrow C)
            ],
            # Narrow-C output block: block last dim == full array dim -> legal;
            # masked stores but 32x less HBM writeback than a 128-padded slab.
            out_specs=pl.BlockSpec((block_b, C), lambda i: (i, 0)),
        ),
        compiler_params=pltpu.CompilerParams(
            dimension_semantics=("parallel",),  # batch tiles shard across TCs on v7x
        ),
    )(x_p, w1, b1, w2, b2, w3, b3)

    # Keep the slice adjacent to the pallas_call: padded rows hold garbage
    # logits (relu(b1) propagated) and must never feed a batch reduction.
    return out_padded[:B]


def init_params(key, input_dim, num_classes):
    """Deterministic synthetic init (Kaiming-uniform-ish, like torch.nn.Linear)."""
    def linear(k, fan_in, fan_out):
        kw, kb = jax.random.split(k)
        bound = 1.0 / jnp.sqrt(fan_in)
        w = jax.random.uniform(kw, (fan_in, fan_out), jnp.float32, -bound, bound)
        b = jax.random.uniform(kb, (1, fan_out), jnp.float32, -bound, bound)
        return w, b

    k1, k2, k3 = jax.random.split(key, 3)
    w1, b1 = linear(k1, input_dim, 256)
    w2, b2 = linear(k2, 256, 128)
    w3, b3 = linear(k3, 128, num_classes)
    return {"w1": w1, "b1": b1, "w2": w2, "b2": b2, "w3": w3, "b3": b3}


def prepare_params(params):
    """One-time weight prep: bf16 MXU operands; biases stay f32.

    Hoisted out of the per-call forward so inference loops pay no per-call
    convert/pad dispatches.
    """
    return {
        "w1": params["w1"].astype(jnp.bfloat16), "b1": params["b1"],
        "w2": params["w2"].astype(jnp.bfloat16), "b2": params["b2"],
        "w3": params["w3"].astype(jnp.bfloat16), "b3": params["b3"],
    }


def reference_forward(x, p):
    # Same numerics as the kernel: bf16 matmul operands, f32 accumulation/biases.
    bf = lambda a: a.astype(jnp.bfloat16)
    h1 = jnp.maximum(
        jnp.dot(bf(x), bf(p["w1"]), preferred_element_type=jnp.float32) + p["b1"], 0.0)
    h2 = jnp.maximum(
        jnp.dot(bf(h1), bf(p["w2"]), preferred_element_type=jnp.float32) + p["b2"], 0.0)
    return jnp.dot(bf(h2), bf(p["w3"]), preferred_element_type=jnp.float32) + p["b3"]


if __name__ == "__main__":
    key = jax.random.PRNGKey(0)
    k_params, k_x = jax.random.split(key)

    batch = 8
    input_dim = 32      # synthetic feature dim (CSV feature count in original)
    num_classes = 4     # synthetic number of pathology classes
    # TODO(synk): CSV loading / LabelEncoder / training loop from the original
    # script are data-pipeline code, not part of the forward pass.

    params = prepare_params(init_params(k_params, input_dim, num_classes))
    x = jax.random.normal(k_x, (batch, input_dim), jnp.float32)

    logits = simple_dnn_forward(x, params)
    logits = jax.block_until_ready(logits)

    ref = reference_forward(x, params)
    assert logits.shape == (batch, num_classes)
    assert jnp.allclose(logits, ref, atol=2e-2, rtol=2e-2), "mismatch vs reference"

    print("KERNEL_OK")
</pallas_src>

<mosaic_0001>
module attributes {stable_mosaic.version = 11 : i64} {
  func.func @_mlp_kernel(%arg0: i32, %arg1: memref<128x32xf32, #tpu.memory_space<vmem>>, %arg2: memref<32x256xbf16, #tpu.memory_space<vmem>>, %arg3: memref<1x256xf32, #tpu.memory_space<vmem>>, %arg4: memref<256x128xbf16, #tpu.memory_space<vmem>>, %arg5: memref<1x128xf32, #tpu.memory_space<vmem>>, %arg6: memref<128x4xbf16, #tpu.memory_space<vmem>>, %arg7: memref<1x4xf32, #tpu.memory_space<vmem>>, %arg8: memref<128x4xf32, #tpu.memory_space<vmem>>) attributes {dimension_semantics = [#tpu.dimension_semantics<parallel>], iteration_bounds = array<i64: 1>, scalar_prefetch = 0 : i64, scratch_operands = 0 : i64, tpu.core_type = #tpu.core_type<tc>, window_params = [{transform_indices = @transform_0, window_bounds = array<i64: 128, 32>}, {pipeline_mode = #tpu.pipeline_mode<synchronous>, transform_indices = @transform_1, window_bounds = array<i64: 32, 256>}, {pipeline_mode = #tpu.pipeline_mode<synchronous>, transform_indices = @transform_2, window_bounds = array<i64: 1, 256>}, {pipeline_mode = #tpu.pipeline_mode<synchronous>, transform_indices = @transform_3, window_bounds = array<i64: 256, 128>}, {pipeline_mode = #tpu.pipeline_mode<synchronous>, transform_indices = @transform_4, window_bounds = array<i64: 1, 128>}, {pipeline_mode = #tpu.pipeline_mode<synchronous>, transform_indices = @transform_5, window_bounds = array<i64: 128, 4>}, {pipeline_mode = #tpu.pipeline_mode<synchronous>, transform_indices = @transform_6, window_bounds = array<i64: 1, 4>}, {transform_indices = @transform_7, window_bounds = array<i64: 128, 4>}]} {
    %c0 = arith.constant 0 : index
    %c0_0 = arith.constant 0 : index
    %0 = vector.load %arg1[%c0, %c0_0] : memref<128x32xf32, #tpu.memory_space<vmem>>, vector<128x32xf32>
    %1 = arith.truncf %0 : vector<128x32xf32> to vector<128x32xbf16>
    %c0_1 = arith.constant 0 : index
    %c0_2 = arith.constant 0 : index
    %2 = vector.load %arg2[%c0_1, %c0_2] : memref<32x256xbf16, #tpu.memory_space<vmem>>, vector<32x256xbf16>
    %cst = arith.constant dense<0.000000e+00> : vector<128x256xf32>
    %3 = tpu.matmul %1, %2, %cst {dimension_numbers = #tpu.dot_dimension_numbers<[1], [0], [0], [1], [0, 0, 1, 1], [], []>} : vector<128x32xbf16>, vector<32x256xbf16>, vector<128x256xf32> -> vector<128x256xf32>
    %c0_3 = arith.constant 0 : index
    %c0_4 = arith.constant 0 : index
    %4 = vector.load %arg3[%c0_3, %c0_4] : memref<1x256xf32, #tpu.memory_space<vmem>>, vector<1x256xf32>
    %5 = vector.broadcast %4 : vector<1x256xf32> to vector<128x256xf32>
    %6 = arith.addf %3, %5 : vector<128x256xf32>
    %cst_5 = arith.constant 0.000000e+00 : f32
    %7 = vector.broadcast %cst_5 : f32 to vector<128x256xf32>
    %8 = arith.maximumf %6, %7 : vector<128x256xf32>
    %9 = arith.truncf %8 : vector<128x256xf32> to vector<128x256xbf16>
    %c0_6 = arith.constant 0 : index
    %c0_7 = arith.constant 0 : index
    %10 = vector.load %arg4[%c0_6, %c0_7] : memref<256x128xbf16, #tpu.memory_space<vmem>>, vector<256x128xbf16>
    %cst_8 = arith.constant dense<0.000000e+00> : vector<128x128xf32>
    %11 = tpu.matmul %9, %10, %cst_8 {dimension_numbers = #tpu.dot_dimension_numbers<[1], [0], [0], [1], [0, 0, 1, 1], [], []>} : vector<128x256xbf16>, vector<256x128xbf16>, vector<128x128xf32> -> vector<128x128xf32>
    %c0_9 = arith.constant 0 : index
    %c0_10 = arith.constant 0 : index
    %12 = vector.load %arg5[%c0_9, %c0_10] : memref<1x128xf32, #tpu.memory_space<vmem>>, vector<1x128xf32>
    %13 = vector.broadcast %12 : vector<1x128xf32> to vector<128x128xf32>
    %14 = arith.addf %11, %13 : vector<128x128xf32>
    %cst_11 = arith.constant 0.000000e+00 : f32
    %15 = vector.broadcast %cst_11 : f32 to vector<128x128xf32>
    %16 = arith.maximumf %14, %15 : vector<128x128xf32>
    %17 = arith.truncf %16 : vector<128x128xf32> to vector<128x128xbf16>
    %c0_12 = arith.constant 0 : index
    %c0_13 = arith.constant 0 : index
    %18 = vector.load %arg6[%c0_12, %c0_13] : memref<128x4xbf16, #tpu.memory_space<vmem>>, vector<128x4xbf16>
    %cst_14 = arith.constant dense<0.000000e+00> : vector<128x4xf32>
    %19 = tpu.matmul %17, %18, %cst_14 {dimension_numbers = #tpu.dot_dimension_numbers<[1], [0], [0], [1], [0, 0, 1, 1], [], []>} : vector<128x128xbf16>, vector<128x4xbf16>, vector<128x4xf32> -> vector<128x4xf32>
    %c0_15 = arith.constant 0 : index
    %c0_16 = arith.constant 0 : index
    %20 = vector.load %arg7[%c0_15, %c0_16] : memref<1x4xf32, #tpu.memory_space<vmem>>, vector<1x4xf32>
    %21 = vector.broadcast %20 : vector<1x4xf32> to vector<128x4xf32>
    %22 = arith.addf %19, %21 : vector<128x4xf32>
    %c0_17 = arith.constant 0 : index
    %c0_18 = arith.constant 0 : index
    %23 = vector.load %arg8[%c0_17, %c0_18] : memref<128x4xf32, #tpu.memory_space<vmem>>, vector<128x4xf32>
    tpu.vector_store %arg8[%c0_17, %c0_18], %22 {strides = array<i32>} : memref<128x4xf32, #tpu.memory_space<vmem>>, vector<128x4xf32>,
    return
  }
  func.func @transform_0(%arg0: i32) -> (i32, i32) {
    %c0_i32 = arith.constant 0 : i32
    %c0_i32_0 = arith.constant 0 : i32
    return %arg0, %c0_i32 : i32, i32
  }
  func.func @transform_1(%arg0: i32) -> (i32, i32) {
    %c0_i32 = arith.constant 0 : i32
    %c0_i32_0 = arith.constant 0 : i32
    %c0_i32_1 = arith.constant 0 : i32
    return %c0_i32, %c0_i32_0 : i32, i32
  }
  func.func @transform_2(%arg0: i32) -> (i32, i32) {
    %c0_i32 = arith.constant 0 : i32
    %c0_i32_0 = arith.constant 0 : i32
    %c0_i32_1 = arith.constant 0 : i32
    return %c0_i32, %c0_i32_0 : i32, i32
  }
  func.func @transform_3(%arg0: i32) -> (i32, i32) {
    %c0_i32 = arith.constant 0 : i32
    %c0_i32_0 = arith.constant 0 : i32
    %c0_i32_1 = arith.constant 0 : i32
    return %c0_i32, %c0_i32_0 : i32, i32
  }
  func.func @transform_4(%arg0: i32) -> (i32, i32) {
    %c0_i32 = arith.constant 0 : i32
    %c0_i32_0 = arith.constant 0 : i32
    %c0_i32_1 = arith.constant 0 : i32
    return %c0_i32, %c0_i32_0 : i32, i32
  }
  func.func @transform_5(%arg0: i32) -> (i32, i32) {
    %c0_i32 = arith.constant 0 : i32
    %c0_i32_0 = arith.constant 0 : i32
    %c0_i32_1 = arith.constant 0 : i32
    return %c0_i32, %c0_i32_0 : i32, i32
  }
  func.func @transform_6(%arg0: i32) -> (i32, i32) {
    %c0_i32 = arith.constant 0 : i32
    %c0_i32_0 = arith.constant 0 : i32
    %c0_i32_1 = arith.constant 0 : i32
    return %c0_i32, %c0_i32_0 : i32, i32
  }
  func.func @transform_7(%arg0: i32) -> (i32, i32) {
    %c0_i32 = arith.constant 0 : i32
    %c0_i32_0 = arith.constant 0 : i32
    return %arg0, %c0_i32 : i32, i32
  }
}

</mosaic_0001>

<bundles_post_ra>
// kernel: simple_dnn_forward.1
= control target key start
LH: loop header
LB: loop body
LE: loop exit
PB: predicated region body
PF: predicated region fallthrough
CT: control target
= control target key end

     0   :  { %v899_v1 = vmov 0   ;;  %vm87_vm0 = vcmask 261120   ;;  %v57_v48 = vlaneseq  ;;  %vm697_vm1 = vcmask 31744   ;;  %s1215_s1 = inlined_call_operand.vmem [shape: bf16[32,256], index: 1, kind: input, shape index: {}]   ;;  %s1216_s0 = inlined_call_operand.vmem [shape: f32[128,32], index: 0, kind: input, shape index: {}]   ;;  %s1217_s3 = inlined_call_operand.vmem [shape: bf16[256,128], index: 3, kind: input, shape index: {}]   ;;  %s1218_s5 = inlined_call_operand.vmem [shape: bf16[128,4], index: 5, kind: input, shape index: {}]   ;;  %s1219_s2 = inlined_call_operand.vmem [shape: f32[1,256], index: 2, kind: input, shape index: {}]   ;;  %s1220_s4 = inlined_call_operand.vmem [shape: f32[1,128], index: 4, kind: input, shape index: {}]   ;;  %s1221_s6 = inlined_call_operand.vmem [shape: f32[1,4], index: 6, kind: input, shape index: {}]   ;;  %s1222_s7 = inlined_call_operand.vmem [shape: f32[128,4], index: 7, kind: output, shape index: {}]  }
   0x1   :  { %v869_v0 = vld [vmem:[%s1215_s1 + $0x14] ss:$8 sps:$4 sm:$0xff]   ;;  %144 = vmatprep.mubr.bf16.mxu0 %v899_v1  ;;  %v871_v2 = vld [vmem:[%s1215_s1 + $0x10] ss:$8 sps:$4 sm:$0xff]   ;;  %v872_v3 = vld [vmem:[%s1215_s1 + $0x4] ss:$8 sps:$4 sm:$0xff]  }
   0x2   :  { %124 = vmatprep.subr.bf16.mxu0 %v869_v0  ;;  %v874_v4 = vld [vmem:[%s1215_s1] ss:$8 sps:$4 sm:$0xff]   ;;  %v875_v8 = vld [vmem:[%s1217_s3 + $0x78] sm:$0xff]   ;;  %v29_v9 = vld [vmem:[%s1216_s0 + $0x10] sm:$0xff]  ;;  %v58_v49 = vshrl.u32 %v57_v48, 7 }
   0x3   :  { %125 = vmatpush1.bf16.msra.mxu0 %v871_v2  ;;  %v27_v5 = vld [vmem:[%s1216_s0] sm:$0xff]  ;;  %v28_v6 = vld [vmem:[%s1216_s0 + $0x8] sm:$0xff]  ;;  %v30_v10 = vld [vmem:[%s1216_s0 + $0x18] sm:$0xff]  ;;  %756 = vmatprep.subr.bf16.mxu1 %v875_v8 }
   0x4   :  { %126 = vmatprep.subr.bf16.mxu0 %v872_v3  ;;  %v43_v7 = vpack.c.bf16 %v28_v6, %v27_v5  ;;  %v876_v11 = vld [vmem:[%s1217_s3 + $0x38] sm:$0xff]   ;;  %v877_v12 = vld [vmem:[%s1217_s3 + $0x70] sm:$0xff]   ;;  %v879_v14 = vld [vmem:[%s1217_s3 + $0x68] sm:$0xff]   ;;  %v44_v15 = vpack.c.bf16 %v30_v10, %v29_v9  ;;  %v63_v50 = vsub.s32 1, %v58_v49  ;;  %v59_v51 = vsub.s32 0, %v58_v49 }
   0x5   :  { %757 = vmatpush3.bf16.msra.mxu1 %v876_v11  ;;  %v878_v13 = vld [vmem:[%s1217_s3 + $0x30] sm:$0xff]   ;;  %v880_v16 = vld [vmem:[%s1217_s3 + $0x28] sm:$0xff]   ;;  %v881_v17 = vld [vmem:[%s1217_s3 + $0x60] sm:$0xff]  }
   0x6   :  { %758 = vmatprep.subr.bf16.mxu1 %v877_v12  ;;  %v31_v18 = vld [vmem:[%s1216_s0 + $0x20] sm:$0xff]  ;;  %v32_v19 = vld [vmem:[%s1216_s0 + $0x28] sm:$0xff]  ;;  %v883_v21 = vld [vmem:[%s1217_s3 + $0x58] sm:$0xff]  }
   0x7   :  { %127 = vmatpush1.bf16.msra.mxu0 %v874_v4  ;;  %v882_v20 = vld [vmem:[%s1217_s3 + $0x20] sm:$0xff]   ;;  %v45_v22 = vpack.c.bf16 %v32_v19, %v31_v18  ;;  %v884_v23 = vld [vmem:[%s1217_s3 + $0x18] sm:$0xff]   ;;  %v33_v24 = vld [vmem:[%s1216_s0 + $0x30] sm:$0xff] }
   0x8   :  { %v34_v25 = vld [vmem:[%s1216_s0 + $0x38] sm:$0xff]  ;;  %v35_v27 = vld [vmem:[%s1216_s0 + $0x40] sm:$0xff]  ;;  %v36_v28 = vld [vmem:[%s1216_s0 + $0x48] sm:$0xff] }
   0x9   :  { %759 = vmatpush3.bf16.msra.mxu1 %v878_v13  ;;  %v46_v26 = vpack.c.bf16 %v34_v25, %v33_v24  ;;  %v47_v29 = vpack.c.bf16 %v36_v28, %v35_v27  ;;  %v37_v30 = vld [vmem:[%s1216_s0 + $0x50] sm:$0xff]  ;;  %v38_v31 = vld [vmem:[%s1216_s0 + $0x58] sm:$0xff]  ;;  %v39_v33 = vld [vmem:[%s1216_s0 + $0x60] sm:$0xff] }
   0xa   :  { %722 = vmatmul.mubr.msk.bf16.vlgmr.msra.gmra.mxu0 %vm87_vm0, %v43_v7  ;;  %760 = vmatprep.subr.bf16.mxu1 %v879_v14  ;;  %v48_v32 = vpack.c.bf16 %v38_v31, %v37_v30  ;;  %v40_v34 = vld [vmem:[%s1216_s0 + $0x68] sm:$0xff]  ;;  %v41_v36 = vld [vmem:[%s1216_s0 + $0x70] sm:$0xff]  ;;  %v42_v37 = vld [vmem:[%s1216_s0 + $0x78] sm:$0xff] }
   0xb   :  { %154 = vmatprep.mubr.bf16.mxu0 %v899_v1  ;;  %v49_v35 = vpack.c.bf16 %v40_v34, %v39_v33  ;;  %v50_v38 = vpack.c.bf16 %v42_v37, %v41_v36  ;;  %v885_v39 = vld [vmem:[%s1217_s3 + $0x50] sm:$0xff]   ;;  %v887_v41 = vld [vmem:[%s1217_s3 + $0x48] sm:$0xff]   ;;  %v889_v43 = vld [vmem:[%s1217_s3 + $0x40] sm:$0xff]  }
   0xc   :  { %v886_v40 = vld [vmem:[%s1217_s3 + $0x10] sm:$0xff]   ;;  %v888_v42 = vld [vmem:[%s1217_s3 + $0x8] sm:$0xff]   ;;  %v890_v44 = vld [vmem:[%s1217_s3] sm:$0xff]  }
   0xd   :  { %761 = vmatpush3.bf16.msra.mxu1 %v880_v16  ;;  %v891_v45 = vld [vmem:[%s1218_s5 + $0x38] sm:$0xff]   ;;  %v892_v46 = vld [vmem:[%s1218_s5 + $0x30] sm:$0xff]   ;;  %v893_v47 = vld [vmem:[%s1218_s5 + $0x28] sm:$0xff]  }
   0xe   :  { %762 = vmatprep.subr.bf16.mxu1 %v881_v17  ;;  %836 = vmatprep.subr.bf16.mxu0 %v891_v45  ;;  %v55_v52 = vld [vmem:[%s1219_s2] sm:$0x3] }
   0xf   :  { %837 = vmatpush3.bf16.msra.mxu0 %v891_v45  ;;  %v1076_v54 = vrot.slane %v55_v52, %v63_v50  ;;  %v1078_v55 = vrot.slane %v55_v52, %v59_v51 }
  0x10   :  { %838 = vmatprep.subr.bf16.mxu0 %v892_v46 }
  0x11   :  { %763 = vmatpush3.bf16.msra.mxu1 %v882_v20 }
  0x12   :  { %723 = vmatmul.mubr.msk.bf16.gmra.mxu0 %vm87_vm0, %v44_v15  ;;  %764 = vmatprep.subr.bf16.mxu1 %v883_v21 }
  0x13   :  { %164 = vmatprep.mubr.bf16.mxu0 %v899_v1  ;;  %839 = vmatpush3.bf16.msra.mxu0 %v892_v46 }
  0x14   :  { %840 = vmatprep.subr.bf16.mxu0 %v893_v47 }
  0x15   :  { %765 = vmatpush3.bf16.msra.mxu1 %v884_v23 }
  0x16   :  { %766 = vmatprep.subr.bf16.mxu1 %v885_v39 }
  0x17   :  { %841 = vmatpush3.bf16.msra.mxu0 %v893_v47 }
  0x19   :  { %767 = vmatpush3.bf16.msra.mxu1 %v886_v40 }
  0x1a   :  { %724 = vmatmul.mubr.msk.bf16.gmra.mxu0 %vm87_vm0, %v45_v22  ;;  %768 = vmatprep.subr.bf16.mxu1 %v887_v41 }
  0x1b   :  { %174 = vmatprep.mubr.bf16.mxu0 %v899_v1 }
  0x1d   :  { %769 = vmatpush3.bf16.msra.mxu1 %v888_v42 }
  0x1e   :  { %770 = vmatprep.subr.bf16.mxu1 %v889_v43 }
  0x21   :  { %771 = vmatpush3.bf16.msra.mxu1 %v890_v44 }
  0x22   :  { %725 = vmatmul.mubr.msk.bf16.gmra.mxu0 %vm87_vm0, %v46_v26 }
  0x23   :  { %184 = vmatprep.mubr.bf16.mxu0 %v899_v1 }
  0x2a   :  { %726 = vmatmul.mubr.msk.bf16.gmra.mxu0 %vm87_vm0, %v47_v29 }
  0x2b   :  { %194 = vmatprep.mubr.bf16.mxu0 %v899_v1 }
  0x32   :  { %727 = vmatmul.mubr.msk.bf16.gmra.mxu0 %vm87_vm0, %v48_v32 }
  0x33   :  { %204 = vmatprep.mubr.bf16.mxu0 %v899_v1 }
  0x3a   :  { %728 = vmatmul.mubr.msk.bf16.gmra.mxu0 %vm87_vm0, %v49_v35 }
  0x3b   :  { %214 = vmatprep.mubr.bf16.mxu0 %v899_v1 }
  0x42   :  { %729 = vmatmul.mubr.msk.bf16.gmra.mxu0 %vm87_vm0, %v50_v38 }
  0xca   :  { %v146_v53 = vpop.f32.mrf.mxu0 }
  0xcb   :  { %v147_v60 = vadd.f32 %v146_v53, %v1078_v55 }
  0xcc   :  { %v148_v56 = vpop.f32.mrf.mxu0 }
  0xcd   :  { %v149_v58 = vadd.f32 %v148_v56, %v1076_v54  ;;  %v225_v3 = vmax.f32 %v147_v60, 0.0 }
  0xce   :  { %v150_v57 = vpop.f32.mrf.mxu0 }
  0xcf   :  { %v151_v59 = vadd.f32 %v150_v57, %v1078_v55  ;;  %v226_v1 = vmax.f32 %v149_v58, 0.0 }
  0xd0   :  { %v152_v61 = vpop.f32.mrf.mxu0 }
  0xd1   :  { %v153_v62 = vadd.f32 %v152_v61, %v1076_v54  ;;  %v227_v63 = vmax.f32 %v151_v59, 0.0 }
  0xd2   :  { %v156_v0 = vpop.f32.mrf.mxu0 }
  0xd3   :  { %v228_v2 = vmax.f32 %v153_v62, 0.0  ;;  %v257_v6 = vpack.c.bf16 %v227_v63, %v225_v3  ;;  %v157_v10 = vadd.f32 %v156_v0, %v1078_v55 }
  0xd4   :  { %v158_v4 = vpop.f32.mrf.mxu0 }
  0xd5   :  { %v258_v5 = vpack.c.bf16 %v228_v2, %v226_v1  ;;  %v159_v8 = vadd.f32 %v158_v4, %v1076_v54  ;;  %v229_v17 = vmax.f32 %v157_v10, 0.0 }
  0xd6   :  { %v160_v7 = vpop.f32.mrf.mxu0 }
  0xd7   :  { %v161_v9 = vadd.f32 %v160_v7, %v1078_v55  ;;  %440 = vmatprep.mubr.bf16.mxu1 %v258_v5  ;;  %v230_v15 = vmax.f32 %v159_v8, 0.0 }
  0xd8   :  { %v162_v11 = vpop.f32.mrf.mxu0  ;;  %441 = vmatmul.mubr.bf16.vlgmr.msra.gmra.mxu1 %v257_v6 }
  0xd9   :  { %v163_v12 = vadd.f32 %v162_v11, %v1076_v54  ;;  %v231_v13 = vmax.f32 %v161_v9, 0.0 }
  0xda   :  { %v166_v14 = vpop.f32.mrf.mxu0 }
  0xdb   :  { %v232_v16 = vmax.f32 %v163_v12, 0.0  ;;  %v259_v20 = vpack.c.bf16 %v231_v13, %v229_v17  ;;  %v167_v24 = vadd.f32 %v166_v14, %v1078_v55 }
  0xdc   :  { %v168_v18 = vpop.f32.mrf.mxu0 }
  0xdd   :  { %v260_v19 = vpack.c.bf16 %v232_v16, %v230_v15  ;;  %v169_v22 = vadd.f32 %v168_v18, %v1076_v54  ;;  %v233_v31 = vmax.f32 %v167_v24, 0.0 }
  0xde   :  { %v170_v21 = vpop.f32.mrf.mxu0 }
  0xdf   :  { %v171_v23 = vadd.f32 %v170_v21, %v1078_v55  ;;  %448 = vmatprep.mubr.bf16.mxu1 %v260_v19  ;;  %v234_v29 = vmax.f32 %v169_v22, 0.0 }
  0xe0   :  { %v172_v25 = vpop.f32.mrf.mxu0  ;;  %449 = vmatmul.mubr.bf16.gmra.mxu1 %v259_v20 }
  0xe1   :  { %v173_v26 = vadd.f32 %v172_v25, %v1076_v54  ;;  %v235_v27 = vmax.f32 %v171_v23, 0.0 }
  0xe2   :  { %v176_v28 = vpop.f32.mrf.mxu0 }
  0xe3   :  { %v236_v30 = vmax.f32 %v173_v26, 0.0  ;;  %v261_v34 = vpack.c.bf16 %v235_v27, %v233_v31  ;;  %v177_v38 = vadd.f32 %v176_v28, %v1078_v55 }
  0xe4   :  { %v178_v32 = vpop.f32.mrf.mxu0 }
  0xe5   :  { %v262_v33 = vpack.c.bf16 %v236_v30, %v234_v29  ;;  %v179_v36 = vadd.f32 %v178_v32, %v1076_v54  ;;  %v237_v45 = vmax.f32 %v177_v38, 0.0 }
  0xe6   :  { %v180_v35 = vpop.f32.mrf.mxu0 }
  0xe7   :  { %v181_v37 = vadd.f32 %v180_v35, %v1078_v55  ;;  %456 = vmatprep.mubr.bf16.mxu1 %v262_v33  ;;  %v238_v43 = vmax.f32 %v179_v36, 0.0 }
  0xe8   :  { %v182_v39 = vpop.f32.mrf.mxu0  ;;  %457 = vmatmul.mubr.bf16.gmra.mxu1 %v261_v34 }
  0xe9   :  { %v183_v40 = vadd.f32 %v182_v39, %v1076_v54  ;;  %v239_v41 = vmax.f32 %v181_v37, 0.0 }
  0xea   :  { %v186_v42 = vpop.f32.mrf.mxu0 }
  0xeb   :  { %v240_v44 = vmax.f32 %v183_v40, 0.0  ;;  %v263_v48 = vpack.c.bf16 %v239_v41, %v237_v45  ;;  %v187_v52 = vadd.f32 %v186_v42, %v1078_v55  ;;  %v894_v41 = vld [vmem:[%s1218_s5 + $0x20] sm:$0xff]   ;;  %v897_v42 = vld [vmem:[%s1218_s5 + $0x8] sm:$0xff]  }
  0xec   :  { %v188_v46 = vpop.f32.mrf.mxu0  ;;  %842 = vmatprep.subr.bf16.mxu0 %v894_v41 }
  0xed   :  { %v264_v47 = vpack.c.bf16 %v240_v44, %v238_v43  ;;  %v189_v50 = vadd.f32 %v188_v46, %v1076_v54  ;;  %v241_v61 = vmax.f32 %v187_v52, 0.0  ;;  %843 = vmatpush3.bf16.msra.mxu0 %v894_v41  ;;  %v898_v43 = vld [vmem:[%s1218_s5] sm:$0xff]  }
  0xee   :  { %v190_v49 = vpop.f32.mrf.mxu0 }
  0xef   :  { %v191_v51 = vadd.f32 %v190_v49, %v1078_v55  ;;  %464 = vmatprep.mubr.bf16.mxu1 %v264_v47  ;;  %v242_v59 = vmax.f32 %v189_v50, 0.0  ;;  %v1130_v47 = vld [vmem:[%s1220_s4] ss:$0 sm:$0xff] }
  0xf0   :  { %v192_v53 = vpop.f32.mrf.mxu0  ;;  %465 = vmatmul.mubr.bf16.gmra.mxu1 %v263_v48 }
  0xf1   :  { %v193_v56 = vadd.f32 %v192_v53, %v1076_v54  ;;  %v243_v57 = vmax.f32 %v191_v51, 0.0 }
  0xf2   :  { %v196_v58 = vpop.f32.mrf.mxu0 }
  0xf3   :  { %v244_v60 = vmax.f32 %v193_v56, 0.0  ;;  %v265_v0 = vpack.c.bf16 %v243_v57, %v241_v61  ;;  %v197_v4 = vadd.f32 %v196_v58, %v1078_v55 }
  0xf4   :  { %v198_v62 = vpop.f32.mrf.mxu0 }
  0xf5   :  { %v266_v63 = vpack.c.bf16 %v244_v60, %v242_v59  ;;  %v199_v2 = vadd.f32 %v198_v62, %v1076_v54  ;;  %v245_v11 = vmax.f32 %v197_v4, 0.0 }
  0xf6   :  { %v200_v1 = vpop.f32.mrf.mxu0 }
  0xf7   :  { %v201_v3 = vadd.f32 %v200_v1, %v1078_v55  ;;  %472 = vmatprep.mubr.bf16.mxu1 %v266_v63  ;;  %v246_v9 = vmax.f32 %v199_v2, 0.0 }
  0xf8   :  { %v202_v5 = vpop.f32.mrf.mxu0  ;;  %473 = vmatmul.mubr.bf16.gmra.mxu1 %v265_v0 }
  0xf9   :  { %v203_v6 = vadd.f32 %v202_v5, %v1076_v54  ;;  %v247_v7 = vmax.f32 %v201_v3, 0.0 }
  0xfa   :  { %v206_v8 = vpop.f32.mrf.mxu0 }
  0xfb   :  { %v248_v10 = vmax.f32 %v203_v6, 0.0  ;;  %v267_v14 = vpack.c.bf16 %v247_v7, %v245_v11  ;;  %v207_v18 = vadd.f32 %v206_v8, %v1078_v55 }
  0xfc   :  { %v208_v12 = vpop.f32.mrf.mxu0 }
  0xfd   :  { %v268_v13 = vpack.c.bf16 %v248_v10, %v246_v9  ;;  %v209_v16 = vadd.f32 %v208_v12, %v1076_v54  ;;  %v249_v25 = vmax.f32 %v207_v18, 0.0 }
  0xfe   :  { %v210_v15 = vpop.f32.mrf.mxu0 }
  0xff   :  { %v211_v17 = vadd.f32 %v210_v15, %v1078_v55  ;;  %480 = vmatprep.mubr.bf16.mxu1 %v268_v13  ;;  %v250_v23 = vmax.f32 %v209_v16, 0.0 }
 0x100   :  { %v212_v19 = vpop.f32.mrf.mxu0  ;;  %481 = vmatmul.mubr.bf16.gmra.mxu1 %v267_v14 }
 0x101   :  { %v213_v20 = vadd.f32 %v212_v19, %v1076_v54  ;;  %v251_v21 = vmax.f32 %v211_v17, 0.0 }
 0x102   :  { %v216_v22 = vpop.f32.mrf.mxu0 }
 0x103   :  { %v252_v24 = vmax.f32 %v213_v20, 0.0  ;;  %v269_v28 = vpack.c.bf16 %v251_v21, %v249_v25  ;;  %v217_v32 = vadd.f32 %v216_v22, %v1078_v55 }
 0x104   :  { %v218_v26 = vpop.f32.mrf.mxu0 }
 0x105   :  { %v270_v27 = vpack.c.bf16 %v252_v24, %v250_v23  ;;  %v219_v30 = vadd.f32 %v218_v26, %v1076_v54  ;;  %v253_v38 = vmax.f32 %v217_v32, 0.0 }
 0x106   :  { %v220_v29 = vpop.f32.mrf.mxu0 }
 0x107   :  { %v221_v31 = vadd.f32 %v220_v29, %v1078_v55  ;;  %488 = vmatprep.mubr.bf16.mxu1 %v270_v27  ;;  %v254_v36 = vmax.f32 %v219_v30, 0.0  ;;  %v895_v55 = vld [vmem:[%s1218_s5 + $0x18] sm:$0xff]  }
 0x108   :  { %v222_v33 = vpop.f32.mrf.mxu0  ;;  %489 = vmatmul.mubr.bf16.gmra.mxu1 %v269_v28  ;;  %844 = vmatprep.subr.bf16.mxu0 %v895_v55 }
 0x109   :  { %v223_v34 = vadd.f32 %v222_v33, %v1076_v54  ;;  %v255_v35 = vmax.f32 %v221_v31, 0.0  ;;  %845 = vmatpush3.bf16.msra.mxu0 %v895_v55  ;;  %v896_v54 = vld [vmem:[%s1218_s5 + $0x10] sm:$0xff]  }
 0x10a   :  { %846 = vmatprep.subr.bf16.mxu0 %v896_v54 }
 0x10b   :  { %v256_v37 = vmax.f32 %v223_v34, 0.0  ;;  %v271_v40 = vpack.c.bf16 %v255_v35, %v253_v38 }
 0x10d   :  { %v272_v39 = vpack.c.bf16 %v256_v37, %v254_v36  ;;  %847 = vmatpush3.bf16.msra.mxu0 %v896_v54 }
 0x10e   :  { %848 = vmatprep.subr.bf16.mxu0 %v897_v42 }
 0x10f   :  { %496 = vmatprep.mubr.bf16.mxu1 %v272_v39 }
 0x110   :  { %497 = vmatmul.mubr.bf16.gmra.mxu1 %v271_v40 }
 0x111   :  { %849 = vmatpush3.bf16.msra.mxu0 %v897_v42 }
 0x112   :  { %850 = vmatprep.subr.bf16.mxu0 %v898_v43 }
 0x115   :  { %851 = vmatpush3.bf16.msra.mxu0 %v898_v43 }
 0x198   :  { %v772_v44 = vpop.f32.mrf.mxu1 }
 0x19a   :  { %v773_v45 = vpop.f32.mrf.mxu1 }
 0x19b   :  { %v774_v46 = vadd.f32 %v773_v45, %v772_v44 }
 0x19c   :  { %v775_v48 = vpop.f32.mrf.mxu1 }
 0x19d   :  { %v443_v50 = vadd.f32 %v774_v46, %v1130_v47 }
 0x19e   :  { %v776_v49 = vpop.f32.mrf.mxu1 }
 0x19f   :  { %v777_v51 = vadd.f32 %v776_v49, %v775_v48  ;;  %v505_v57 = vmax.f32 %v443_v50, 0.0 }
 0x1a0   :  { %v778_v52 = vpop.f32.mrf.mxu1 }
 0x1a1   :  { %v446_v53 = vadd.f32 %v777_v51, %v1130_v47 }
 0x1a2   :  { %v779_v56 = vpop.f32.mrf.mxu1 }
 0x1a3   :  { %v506_v58 = vmax.f32 %v446_v53, 0.0  ;;  %v780_v59 = vadd.f32 %v779_v56, %v778_v52 }
 0x1a4   :  { %v781_v60 = vpop.f32.mrf.mxu1 }
 0x1a5   :  { %v521_v61 = vpack.c.bf16 %v506_v58, %v505_v57  ;;  %v451_v63 = vadd.f32 %v780_v59, %v1130_v47 }
 0x1a6   :  { %v782_v62 = vpop.f32.mrf.mxu1 }
 0x1a7   :  { %v783_v0 = vadd.f32 %v782_v62, %v781_v60  ;;  %852 = vmatprep.mubr.bf16.mxu0 %v521_v61  ;;  %v507_v4 = vmax.f32 %v451_v63, 0.0 }
 0x1a8   :  { %v784_v1 = vpop.f32.mrf.mxu1 }
 0x1a9   :  { %v454_v2 = vadd.f32 %v783_v0, %v1130_v47 }
 0x1aa   :  { %v785_v3 = vpop.f32.mrf.mxu1 }
 0x1ab   :  { %v508_v5 = vmax.f32 %v454_v2, 0.0  ;;  %v786_v6 = vadd.f32 %v785_v3, %v784_v1 }
 0x1ac   :  { %v787_v7 = vpop.f32.mrf.mxu1 }
 0x1ad   :  { %v522_v8 = vpack.c.bf16 %v508_v5, %v507_v4  ;;  %v459_v10 = vadd.f32 %v786_v6, %v1130_v47 }
 0x1ae   :  { %v788_v9 = vpop.f32.mrf.mxu1 }
 0x1af   :  { %v789_v11 = vadd.f32 %v788_v9, %v787_v7  ;;  %853 = vmatmul.mubr.bf16.vlgmr.msra.gmra.mxu0 %v522_v8  ;;  %v509_v15 = vmax.f32 %v459_v10, 0.0  ;;  %v747_v8 = vld [vmem:[%s1221_s6] ss:$0 sm:$0xff] }
 0x1b0   :  { %v790_v12 = vpop.f32.mrf.mxu1 }
 0x1b1   :  { %v462_v13 = vadd.f32 %v789_v11, %v1130_v47 }
 0x1b2   :  { %v791_v14 = vpop.f32.mrf.mxu1 }
 0x1b3   :  { %v510_v16 = vmax.f32 %v462_v13, 0.0  ;;  %v792_v17 = vadd.f32 %v791_v14, %v790_v12 }
 0x1b4   :  { %v793_v18 = vpop.f32.mrf.mxu1 }
 0x1b5   :  { %v523_v19 = vpack.c.bf16 %v510_v16, %v509_v15  ;;  %v467_v21 = vadd.f32 %v792_v17, %v1130_v47 }
 0x1b6   :  { %v794_v20 = vpop.f32.mrf.mxu1 }
 0x1b7   :  { %v795_v22 = vadd.f32 %v794_v20, %v793_v18  ;;  %856 = vmatprep.mubr.bf16.mxu0 %v523_v19  ;;  %v511_v26 = vmax.f32 %v467_v21, 0.0 }
 0x1b8   :  { %v796_v23 = vpop.f32.mrf.mxu1 }
 0x1b9   :  { %v470_v24 = vadd.f32 %v795_v22, %v1130_v47 }
 0x1ba   :  { %v797_v25 = vpop.f32.mrf.mxu1 }
 0x1bb   :  { %v512_v27 = vmax.f32 %v470_v24, 0.0  ;;  %v798_v28 = vadd.f32 %v797_v25, %v796_v23 }
 0x1bc   :  { %v799_v29 = vpop.f32.mrf.mxu1 }
 0x1bd   :  { %v524_v30 = vpack.c.bf16 %v512_v27, %v511_v26  ;;  %v475_v32 = vadd.f32 %v798_v28, %v1130_v47 }
 0x1be   :  { %v800_v31 = vpop.f32.mrf.mxu1 }
 0x1bf   :  { %v801_v33 = vadd.f32 %v800_v31, %v799_v29  ;;  %857 = vmatmul.mubr.bf16.gmra.mxu0 %v524_v30  ;;  %v513_v37 = vmax.f32 %v475_v32, 0.0 }
 0x1c0   :  { %v802_v34 = vpop.f32.mrf.mxu1 }
 0x1c1   :  { %v478_v35 = vadd.f32 %v801_v33, %v1130_v47 }
 0x1c2   :  { %v803_v36 = vpop.f32.mrf.mxu1 }
 0x1c3   :  { %v514_v38 = vmax.f32 %v478_v35, 0.0  ;;  %v804_v39 = vadd.f32 %v803_v36, %v802_v34 }
 0x1c4   :  { %v805_v40 = vpop.f32.mrf.mxu1 }
 0x1c5   :  { %v525_v41 = vpack.c.bf16 %v514_v38, %v513_v37  ;;  %v483_v54 = vadd.f32 %v804_v39, %v1130_v47 }
 0x1c6   :  { %v806_v55 = vpop.f32.mrf.mxu1 }
 0x1c7   :  { %v807_v42 = vadd.f32 %v806_v55, %v805_v40  ;;  %860 = vmatprep.mubr.bf16.mxu0 %v525_v41  ;;  %v515_v46 = vmax.f32 %v483_v54, 0.0 }
 0x1c8   :  { %v808_v43 = vpop.f32.mrf.mxu1 }
 0x1c9   :  { %v486_v44 = vadd.f32 %v807_v42, %v1130_v47 }
 0x1ca   :  { %v809_v45 = vpop.f32.mrf.mxu1 }
 0x1cb   :  { %v516_v48 = vmax.f32 %v486_v44, 0.0  ;;  %v810_v49 = vadd.f32 %v809_v45, %v808_v43 }
 0x1cc   :  { %v811_v50 = vpop.f32.mrf.mxu1 }
 0x1cd   :  { %v526_v51 = vpack.c.bf16 %v516_v48, %v515_v46  ;;  %v491_v53 = vadd.f32 %v810_v49, %v1130_v47 }
 0x1ce   :  { %v812_v52 = vpop.f32.mrf.mxu1 }
 0x1cf   :  { %v813_v56 = vadd.f32 %v812_v52, %v811_v50  ;;  %861 = vmatmul.mubr.bf16.gmra.mxu0 %v526_v51  ;;  %v517_v60 = vmax.f32 %v491_v53, 0.0 }
 0x1d0   :  { %v814_v57 = vpop.f32.mrf.mxu1 }
 0x1d1   :  { %v494_v58 = vadd.f32 %v813_v56, %v1130_v47 }
 0x1d2   :  { %v815_v59 = vpop.f32.mrf.mxu1 }
 0x1d3   :  { %v518_v61 = vmax.f32 %v494_v58, 0.0  ;;  %v816_v62 = vadd.f32 %v815_v59, %v814_v57 }
 0x1d4   :  { %v817_v63 = vpop.f32.mrf.mxu1 }
 0x1d5   :  { %v527_v0 = vpack.c.bf16 %v518_v61, %v517_v60  ;;  %v499_v2 = vadd.f32 %v816_v62, %v1130_v47 }
 0x1d6   :  { %v818_v1 = vpop.f32.mrf.mxu1 }
 0x1d7   :  { %v819_v3 = vadd.f32 %v818_v1, %v817_v63  ;;  %864 = vmatprep.mubr.bf16.mxu0 %v527_v0  ;;  %v519_v5 = vmax.f32 %v499_v2, 0.0 }
 0x1d9   :  { %v502_v4 = vadd.f32 %v819_v3, %v1130_v47 }
 0x1db   :  { %v520_v6 = vmax.f32 %v502_v4, 0.0 }
 0x1dd   :  { %v528_v7 = vpack.c.bf16 %v520_v6, %v519_v5 }
 0x1df   :  { %865 = vmatmul.mubr.bf16.gmra.mxu0 %v528_v7 }
 0x26f   :  { %v854_v9 = vpop.f32.mrf.mxu0 }
 0x270   :  { %v643_v10 = vadd.f32 %v854_v9, %v747_v8 }
 0x271   :  { %v634_v11 = vpop.f32.mrf.mxu0 }
 0x272   :  { %700 = vst.msk [vmem:[%s1222_s7 + $0x10] sm:$0xff] %vm697_vm1, %v643_v10  ;;  %v635_v12 = vadd.f32 %v747_v8, %v634_v11 }
 0x273   :  { %v855_v13 = vpop.f32.mrf.mxu0 }
 0x274   :  { %698 = vst.msk [vmem:[%s1222_s7] sm:$0xff] %vm697_vm1, %v635_v12  ;;  %v646_v47 = vadd.f32 %v855_v13, %v747_v8 }
 0x275   :  { %v637_v14 = vpop.f32.mrf.mxu0 }
 0x276   :  { %701 = vst.msk [vmem:[%s1222_s7 + $0x18] sm:$0xff] %vm697_vm1, %v646_v47  ;;  %v638_v15 = vadd.f32 %v747_v8, %v637_v14 }
 0x278   :  { %699 = vst.msk [vmem:[%s1222_s7 + $0x8] sm:$0xff] %vm697_vm1, %v638_v15 }
 0x27f   :  { %v858_v16 = vpop.f32.mrf.mxu0 }
 0x280   :  { %v659_v17 = vadd.f32 %v858_v16, %v747_v8 }
 0x281   :  { %v650_v18 = vpop.f32.mrf.mxu0 }
 0x282   :  { %704 = vst.msk [vmem:[%s1222_s7 + $0x30] sm:$0xff] %vm697_vm1, %v659_v17  ;;  %v651_v19 = vadd.f32 %v747_v8, %v650_v18 }
 0x283   :  { %v859_v20 = vpop.f32.mrf.mxu0 }
 0x284   :  { %702 = vst.msk [vmem:[%s1222_s7 + $0x20] sm:$0xff] %vm697_vm1, %v651_v19  ;;  %v662_v21 = vadd.f32 %v859_v20, %v747_v8 }
 0x285   :  { %v653_v22 = vpop.f32.mrf.mxu0 }
 0x286   :  { %705 = vst.msk [vmem:[%s1222_s7 + $0x38] sm:$0xff] %vm697_vm1, %v662_v21  ;;  %v654_v23 = vadd.f32 %v747_v8, %v653_v22 }
 0x288   :  { %703 = vst.msk [vmem:[%s1222_s7 + $0x28] sm:$0xff] %vm697_vm1, %v654_v23 }
 0x28f   :  { %v862_v24 = vpop.f32.mrf.mxu0 }
 0x290   :  { %v675_v25 = vadd.f32 %v862_v24, %v747_v8 }
 0x291   :  { %v666_v26 = vpop.f32.mrf.mxu0 }
 0x292   :  { %708 = vst.msk [vmem:[%s1222_s7 + $0x50] sm:$0xff] %vm697_vm1, %v675_v25  ;;  %v667_v27 = vadd.f32 %v747_v8, %v666_v26 }
 0x293   :  { %v863_v28 = vpop.f32.mrf.mxu0 }
 0x294   :  { %706 = vst.msk [vmem:[%s1222_s7 + $0x40] sm:$0xff] %vm697_vm1, %v667_v27  ;;  %v678_v29 = vadd.f32 %v863_v28, %v747_v8 }
 0x295   :  { %v669_v30 = vpop.f32.mrf.mxu0 }
 0x296   :  { %709 = vst.msk [vmem:[%s1222_s7 + $0x58] sm:$0xff] %vm697_vm1, %v678_v29  ;;  %v670_v31 = vadd.f32 %v747_v8, %v669_v30 }
 0x298   :  { %707 = vst.msk [vmem:[%s1222_s7 + $0x48] sm:$0xff] %vm697_vm1, %v670_v31 }
 0x29f   :  { %v866_v32 = vpop.f32.mrf.mxu0 }
 0x2a0   :  { %v691_v33 = vadd.f32 %v866_v32, %v747_v8 }
 0x2a1   :  { %v682_v34 = vpop.f32.mrf.mxu0 }
 0x2a2   :  { %712 = vst.msk [vmem:[%s1222_s7 + $0x70] sm:$0xff] %vm697_vm1, %v691_v33  ;;  %v683_v35 = vadd.f32 %v747_v8, %v682_v34 }
 0x2a3   :  { %v867_v36 = vpop.f32.mrf.mxu0 }
 0x2a4   :  { %710 = vst.msk [vmem:[%s1222_s7 + $0x60] sm:$0xff] %vm697_vm1, %v683_v35  ;;  %v694_v37 = vadd.f32 %v867_v36, %v747_v8 }
 0x2a5   :  { %v685_v38 = vpop.f32.mrf.mxu0 }
 0x2a6   :  { %713 = vst.msk [vmem:[%s1222_s7 + $0x78] sm:$0xff] %vm697_vm1, %v694_v37  ;;  %v686_v39 = vadd.f32 %v747_v8, %v685_v38 }
 0x2a8   :  { %711 = vst.msk [vmem:[%s1222_s7 + $0x68] sm:$0xff] %vm697_vm1, %v686_v39 }

</bundles_post_ra>
